<compile_context>
chip_gen: v5e
topology: v5e:2x2
jax: 0.10.0
libtpu: 0.0.40
codegen_flags: <defaults>
</compile_context>

<pallas_src>
import jax
import jax.numpy as jnp
from jax.experimental import pallas as pl
from jax.experimental.pallas import tpu as pltpu


def scorer_kernel(x_ref, w1_ref, b1_ref, w2_ref, b2_ref, o_ref):
    # hidden = tanh(x @ W1 + b1)   -- MXU matmul, f32 accumulate, f32 tanh.
    # TODO(synk): on v6e/v7x a bf16 tanh would double EUP throughput if the
    # EUP slot ever binds after bf16 streaming; kept f32 (v5e has no bf16 EUP).
    h = jnp.tanh(
        jnp.dot(x_ref[...], w1_ref[...], preferred_element_type=jnp.float32)
        + b1_ref[...]
    )
    # score = sigmoid(h @ w2 + b2), computed as (1, H2) . (TB, H2)^T -> (1, TB)
    # (transposed-RHS MXU feed, "q @ k.T" pattern) so the result is lane-major
    # and the output store is a fully packed vst -- no (TB,1) relayout.
    logit = jax.lax.dot_general(
        w2_ref[...],
        h,
        dimension_numbers=(((1,), (1,)), ((), ())),
        preferred_element_type=jnp.float32,
    )
    logit = logit + b2_ref[...]  # (1,1) broadcasts over lanes
    o_ref[...] = jax.nn.sigmoid(logit).astype(o_ref.dtype)


def _vmem_capacity_bytes():
    """Physical VMEM per TensorCore; conservative fallback if query fails."""
    try:
        info = pltpu.get_tpu_info()
        cap = getattr(info, "vmem_capacity_bytes", None)
        if cap:
            return int(cap)
    except Exception:
        pass
    return 64 * 1024 * 1024  # v7x per-TC size (smallest current generation)


def _pick_tb(B, fits, tile_b_max):
    """Batch tile: lane-aligned, VMEM-fitting, >=2 tiles once B >= 256."""
    if B < 256:
        return B  # single full-dim tile; grid/megacore split not worth it
    cands = [c for c in (1024, 512, 256, 128)
             if c <= tile_b_max and c <= B // 2 and fits(c)]
    if not cands:
        return 128
    for c in cands:  # descending: biggest tile whose tail waste is bounded
        if pl.cdiv(B, c) * c - B <= max(B // 8, c // 4):
            return c
    return min(cands, key=lambda c: pl.cdiv(B, c) * c - B)


# Whether pipeline_mode=pl.Buffered(1) is accepted by this JAX build.
_SINGLE_BUFFER_OK = [True]


def scorer_forward(vec, w1, b1, w2, b2, *, compute_dtype=jnp.bfloat16,
                   tile_b_max=1024):
    """vec: [B, H], w1: [H, H//2], b1: [H//2], w2: [H//2, 1], b2: [1] -> [B, 1]."""
    B, H = vec.shape
    H2 = w1.shape[1]
    isz = jnp.dtype(compute_dtype).itemsize

    usable_vmem = (3 * _vmem_capacity_bytes()) // 4  # ~48 MiB v7x, ~96 MiB v5e/v6e

    def budget(tb):
        return (2 * tb * H * isz          # double-buffered streamed x tile
                + 2 * H * H2 * isz        # W1 (counted x2: conservative)
                + 2 * (2 * H2 + 8) * 4    # b1 / w2 row / b2 (f32)
                + 2 * tb * 4              # (1, tb) f32 output tile
                + 2 * tb * H2 * 4         # hidden activations / f32 temporaries
                + (2 << 20))              # slack for compiler-internal scratch

    tb = _pick_tb(B, lambda c: budget(c) <= usable_vmem, tile_b_max)
    n_tiles = pl.cdiv(B, tb)
    bp_out = n_tiles * tb
    # TODO(synk): if H is so large that resident W1 alone exceeds the VMEM
    # budget, a K-tiled accumulation over H is needed instead.
    vmem_limit = int(min(usable_vmem, max(32 * 1024 * 1024, budget(tb))))

    # No host-side pad of x: the tail grid step runs on a partial block whose
    # out-of-range rows are undefined-but-finite and are discarded below.
    x = vec.astype(compute_dtype)
    w1c = w1.astype(compute_dtype)
    b1_2d = b1.reshape(1, H2).astype(jnp.float32)
    w2_row = w2.reshape(1, H2).astype(jnp.float32)
    b2_2d = b2.reshape(1, 1).astype(jnp.float32)

    cost = pl.CostEstimate(
        flops=2 * bp_out * H * H2 + 2 * bp_out * H2,
        transcendentals=bp_out * (H2 + 1),
        bytes_accessed=B * H * isz + H * H2 * isz + 4 * (2 * H2 + 1) + bp_out * 4,
    )

    def invoke(single_buffer_weights):
        def resident(shape):
            # Constant index map -> the block never changes; single buffer
            # halves its VMEM footprint (biggest win for W1).
            if single_buffer_weights:
                return pl.BlockSpec(shape, lambda i: (0,) * len(shape),
                                    pipeline_mode=pl.Buffered(1))
            return pl.BlockSpec(shape, lambda i: (0,) * len(shape))

        return pl.pallas_call(
            scorer_kernel,
            out_shape=jax.ShapeDtypeStruct((1, bp_out), jnp.float32),
            grid=(n_tiles,),
            in_specs=[
                pl.BlockSpec((tb, H), lambda i: (i, 0)),  # x: streamed per tile
                resident((H, H2)),                        # W1: resident
                resident((1, H2)),                        # b1: resident
                resident((1, H2)),                        # w2 row: resident
                resident((1, 1)),                         # b2: resident
            ],
            out_specs=pl.BlockSpec((1, tb), lambda i: (0, i)),  # lane-dense row
            compiler_params=pltpu.CompilerParams(
                dimension_semantics=("parallel",),  # megacore split on v7x
                vmem_limit_bytes=vmem_limit,
            ),
            cost_estimate=cost,
        )(x, w1c, b1_2d, w2_row, b2_2d)

    if _SINGLE_BUFFER_OK[0]:
        try:
            out = invoke(True)
        except Exception:
            _SINGLE_BUFFER_OK[0] = False
            out = invoke(False)
    else:
        out = invoke(False)

    return out[0, :B].reshape(B, 1)


def init_params(key, hidden_size):
    """Deterministic init matching nn.Linear's U(-1/sqrt(in), 1/sqrt(in))."""
    h2 = hidden_size // 2
    k1, k2, k3, k4 = jax.random.split(key, 4)
    lim1 = 1.0 / jnp.sqrt(hidden_size)
    lim2 = 1.0 / jnp.sqrt(h2)
    w1 = jax.random.uniform(k1, (hidden_size, h2), jnp.float32, -lim1, lim1)
    b1 = jax.random.uniform(k2, (h2,), jnp.float32, -lim1, lim1)
    w2 = jax.random.uniform(k3, (h2, 1), jnp.float32, -lim2, lim2)
    b2 = jax.random.uniform(k4, (1,), jnp.float32, -lim2, lim2)
    return w1, b1, w2, b2


def _ref(vec, w1, b1, w2, b2):
    return jax.nn.sigmoid(jnp.tanh(vec @ w1 + b1) @ w2 + b2)


if __name__ == "__main__":
    key = jax.random.PRNGKey(0)
    k_x, k_p, k_x2, k_p2 = jax.random.split(key, 4)

    # --- small shape consistent with the module (batch=8, hidden=32) ---
    batch, hidden = 8, 32
    vec = jax.random.normal(k_x, (batch, hidden), jnp.float32)
    w1, b1, w2, b2 = init_params(k_p, hidden)

    # default path: bf16 streaming (compare against a bf16-rounded reference)
    out = jax.block_until_ready(scorer_forward(vec, w1, b1, w2, b2))
    vec_r = vec.astype(jnp.bfloat16).astype(jnp.float32)
    w1_r = w1.astype(jnp.bfloat16).astype(jnp.float32)
    ref_bf = _ref(vec_r, w1_r, b1, w2, b2)
    assert out.shape == (batch, 1)
    assert jnp.allclose(out, ref_bf, atol=2e-3, rtol=2e-3)

    # exact f32 path
    out_f32 = jax.block_until_ready(
        scorer_forward(vec, w1, b1, w2, b2, compute_dtype=jnp.float32))
    ref = _ref(vec, w1, b1, w2, b2)
    assert jnp.allclose(out_f32, ref, atol=1e-4, rtol=1e-4)

    # --- multi-tile path: batch > tile, ragged tail (no host-side pad) ---
    batch2, hidden2 = 1000, 256
    vec2 = jax.random.normal(k_x2, (batch2, hidden2), jnp.float32)
    p2 = init_params(k_p2, hidden2)

    out2 = jax.block_until_ready(scorer_forward(vec2, *p2))          # bf16 default
    vec2_r = vec2.astype(jnp.bfloat16).astype(jnp.float32)
    w1_r2 = p2[0].astype(jnp.bfloat16).astype(jnp.float32)
    ref2 = _ref(vec2_r, w1_r2, p2[1], p2[2], p2[3])
    assert out2.shape == (batch2, 1)
    assert jnp.allclose(out2, ref2, atol=2e-3, rtol=2e-3)

    out2_f32 = jax.block_until_ready(
        scorer_forward(vec2, *p2, compute_dtype=jnp.float32))
    ref2_f32 = _ref(vec2, *p2)
    assert jnp.allclose(out2_f32, ref2_f32, atol=1e-4, rtol=1e-4)

    print("KERNEL_OK")
</pallas_src>

<mosaic_0001>
module attributes {stable_mosaic.version = 11 : i64} {
  func.func @scorer_kernel(%arg0: i32, %arg1: memref<8x32xbf16, #tpu.memory_space<vmem>>, %arg2: memref<32x16xbf16, #tpu.memory_space<vmem>>, %arg3: memref<1x16xf32, #tpu.memory_space<vmem>>, %arg4: memref<1x16xf32, #tpu.memory_space<vmem>>, %arg5: memref<1x1xf32, #tpu.memory_space<vmem>>, %arg6: memref<1x8xf32, #tpu.memory_space<vmem>>) attributes {dimension_semantics = [#tpu.dimension_semantics<parallel>], iteration_bounds = array<i64: 1>, scalar_prefetch = 0 : i64, scratch_operands = 0 : i64, tpu.core_type = #tpu.core_type<tc>, window_params = [{transform_indices = @transform_0, window_bounds = array<i64: 8, 32>}, {pipeline_mode = #tpu.pipeline_mode<synchronous>, transform_indices = @transform_1, window_bounds = array<i64: 32, 16>}, {pipeline_mode = #tpu.pipeline_mode<synchronous>, transform_indices = @transform_2, window_bounds = array<i64: 1, 16>}, {pipeline_mode = #tpu.pipeline_mode<synchronous>, transform_indices = @transform_3, window_bounds = array<i64: 1, 16>}, {pipeline_mode = #tpu.pipeline_mode<synchronous>, transform_indices = @transform_4, window_bounds = array<i64: 1, 1>}, {transform_indices = @transform_5, window_bounds = array<i64: 1, 8>}]} {
    %c0 = arith.constant 0 : index
    %c0_0 = arith.constant 0 : index
    %0 = vector.load %arg1[%c0, %c0_0] : memref<8x32xbf16, #tpu.memory_space<vmem>>, vector<8x32xbf16>
    %c0_1 = arith.constant 0 : index
    %c0_2 = arith.constant 0 : index
    %1 = vector.load %arg2[%c0_1, %c0_2] : memref<32x16xbf16, #tpu.memory_space<vmem>>, vector<32x16xbf16>
    %cst = arith.constant dense<0.000000e+00> : vector<8x16xf32>
    %2 = tpu.matmul %0, %1, %cst {dimension_numbers = #tpu.dot_dimension_numbers<[1], [0], [0], [1], [0, 0, 1, 1], [], []>} : vector<8x32xbf16>, vector<32x16xbf16>, vector<8x16xf32> -> vector<8x16xf32>
    %c0_3 = arith.constant 0 : index
    %c0_4 = arith.constant 0 : index
    %3 = vector.load %arg3[%c0_3, %c0_4] : memref<1x16xf32, #tpu.memory_space<vmem>>, vector<1x16xf32>
    %4 = vector.broadcast %3 : vector<1x16xf32> to vector<8x16xf32>
    %5 = arith.addf %2, %4 : vector<8x16xf32>
    %6 = math.tanh %5 : vector<8x16xf32>
    %c0_5 = arith.constant 0 : index
    %c0_6 = arith.constant 0 : index
    %7 = vector.load %arg4[%c0_5, %c0_6] : memref<1x16xf32, #tpu.memory_space<vmem>>, vector<1x16xf32>
    %cst_7 = arith.constant dense<0.000000e+00> : vector<1x8xf32>
    %8 = tpu.matmul %7, %6, %cst_7 {dimension_numbers = #tpu.dot_dimension_numbers<[1], [1], [0], [0], [0, 0, 1, 0], [], []>} : vector<1x16xf32>, vector<8x16xf32>, vector<1x8xf32> -> vector<1x8xf32>
    %c0_8 = arith.constant 0 : index
    %c0_9 = arith.constant 0 : index
    %9 = vector.load %arg5[%c0_8, %c0_9] : memref<1x1xf32, #tpu.memory_space<vmem>>, vector<1x1xf32>
    %10 = vector.broadcast %9 : vector<1x1xf32> to vector<1x8xf32>
    %11 = arith.addf %8, %10 : vector<1x8xf32>
    %12 = arith.negf %11 : vector<1x8xf32>
    %13 = math.exp %12 : vector<1x8xf32>
    %cst_10 = arith.constant 1.000000e+00 : f32
    %14 = vector.broadcast %cst_10 : f32 to vector<1x8xf32>
    %15 = arith.addf %14, %13 : vector<1x8xf32>
    %16 = arith.divf %14, %15 : vector<1x8xf32>
    %c0_11 = arith.constant 0 : index
    %c0_12 = arith.constant 0 : index
    %17 = vector.load %arg6[%c0_11, %c0_12] : memref<1x8xf32, #tpu.memory_space<vmem>>, vector<1x8xf32>
    tpu.vector_store %arg6[%c0_11, %c0_12], %16 {strides = array<i32>} : memref<1x8xf32, #tpu.memory_space<vmem>>, vector<1x8xf32>,
    return
  }
  func.func @transform_0(%arg0: i32) -> (i32, i32) {
    %c0_i32 = arith.constant 0 : i32
    %c0_i32_0 = arith.constant 0 : i32
    return %arg0, %c0_i32 : i32, i32
  }
  func.func @transform_1(%arg0: i32) -> (i32, i32) {
    %c0_i32 = arith.constant 0 : i32
    %c0_i32_0 = arith.constant 0 : i32
    %c0_i32_1 = arith.constant 0 : i32
    return %c0_i32, %c0_i32_0 : i32, i32
  }
  func.func @transform_2(%arg0: i32) -> (i32, i32) {
    %c0_i32 = arith.constant 0 : i32
    %c0_i32_0 = arith.constant 0 : i32
    %c0_i32_1 = arith.constant 0 : i32
    return %c0_i32, %c0_i32_0 : i32, i32
  }
  func.func @transform_3(%arg0: i32) -> (i32, i32) {
    %c0_i32 = arith.constant 0 : i32
    %c0_i32_0 = arith.constant 0 : i32
    %c0_i32_1 = arith.constant 0 : i32
    return %c0_i32, %c0_i32_0 : i32, i32
  }
  func.func @transform_4(%arg0: i32) -> (i32, i32) {
    %c0_i32 = arith.constant 0 : i32
    %c0_i32_0 = arith.constant 0 : i32
    %c0_i32_1 = arith.constant 0 : i32
    return %c0_i32, %c0_i32_0 : i32, i32
  }
  func.func @transform_5(%arg0: i32) -> (i32, i32) {
    %c0_i32 = arith.constant 0 : i32
    %c0_i32_0 = arith.constant 0 : i32
    return %c0_i32, %arg0 : i32, i32
  }
}

module attributes {stable_mosaic.version = 11 : i64} {
  func.func @scorer_kernel(%arg0: i32, %arg1: memref<8x32xbf16, #tpu.memory_space<vmem>>, %arg2: memref<32x16xbf16, #tpu.memory_space<vmem>>, %arg3: memref<1x16xf32, #tpu.memory_space<vmem>>, %arg4: memref<1x16xf32, #tpu.memory_space<vmem>>, %arg5: memref<1x1xf32, #tpu.memory_space<vmem>>, %arg6: memref<1x8xf32, #tpu.memory_space<vmem>>) attributes {dimension_semantics = [#tpu.dimension_semantics<parallel>], iteration_bounds = array<i64: 1>, scalar_prefetch = 0 : i64, scratch_operands = 0 : i64, tpu.core_type = #tpu.core_type<tc>, window_params = [{transform_indices = @transform_0, window_bounds = array<i64: 8, 32>}, {pipeline_mode = #tpu.pipeline_mode<synchronous>, transform_indices = @transform_1, window_bounds = array<i64: 32, 16>}, {pipeline_mode = #tpu.pipeline_mode<synchronous>, transform_indices = @transform_2, window_bounds = array<i64: 1, 16>}, {pipeline_mode = #tpu.pipeline_mode<synchronous>, transform_indices = @transform_3, window_bounds = array<i64: 1, 16>}, {pipeline_mode = #tpu.pipeline_mode<synchronous>, transform_indices = @transform_4, window_bounds = array<i64: 1, 1>}, {transform_indices = @transform_5, window_bounds = array<i64: 1, 8>}]} {
    %c0 = arith.constant 0 : index
    %c0_0 = arith.constant 0 : index
    %0 = vector.load %arg1[%c0, %c0_0] : memref<8x32xbf16, #tpu.memory_space<vmem>>, vector<8x32xbf16>
    %c0_1 = arith.constant 0 : index
    %c0_2 = arith.constant 0 : index
    %1 = vector.load %arg2[%c0_1, %c0_2] : memref<32x16xbf16, #tpu.memory_space<vmem>>, vector<32x16xbf16>
    %cst = arith.constant dense<0.000000e+00> : vector<8x16xf32>
    %2 = tpu.matmul %0, %1, %cst {dimension_numbers = #tpu.dot_dimension_numbers<[1], [0], [0], [1], [0, 0, 1, 1], [], []>} : vector<8x32xbf16>, vector<32x16xbf16>, vector<8x16xf32> -> vector<8x16xf32>
    %c0_3 = arith.constant 0 : index
    %c0_4 = arith.constant 0 : index
    %3 = vector.load %arg3[%c0_3, %c0_4] : memref<1x16xf32, #tpu.memory_space<vmem>>, vector<1x16xf32>
    %4 = vector.broadcast %3 : vector<1x16xf32> to vector<8x16xf32>
    %5 = arith.addf %2, %4 : vector<8x16xf32>
    %6 = math.tanh %5 : vector<8x16xf32>
    %c0_5 = arith.constant 0 : index
    %c0_6 = arith.constant 0 : index
    %7 = vector.load %arg4[%c0_5, %c0_6] : memref<1x16xf32, #tpu.memory_space<vmem>>, vector<1x16xf32>
    %cst_7 = arith.constant dense<0.000000e+00> : vector<1x8xf32>
    %8 = tpu.matmul %7, %6, %cst_7 {dimension_numbers = #tpu.dot_dimension_numbers<[1], [1], [0], [0], [0, 0, 1, 0], [], []>} : vector<1x16xf32>, vector<8x16xf32>, vector<1x8xf32> -> vector<1x8xf32>
    %c0_8 = arith.constant 0 : index
    %c0_9 = arith.constant 0 : index
    %9 = vector.load %arg5[%c0_8, %c0_9] : memref<1x1xf32, #tpu.memory_space<vmem>>, vector<1x1xf32>
    %10 = vector.broadcast %9 : vector<1x1xf32> to vector<1x8xf32>
    %11 = arith.addf %8, %10 : vector<1x8xf32>
    %12 = arith.negf %11 : vector<1x8xf32>
    %13 = math.exp %12 : vector<1x8xf32>
    %cst_10 = arith.constant 1.000000e+00 : f32
    %14 = vector.broadcast %cst_10 : f32 to vector<1x8xf32>
    %15 = arith.addf %14, %13 : vector<1x8xf32>
    %16 = arith.divf %14, %15 : vector<1x8xf32>
    %c0_11 = arith.constant 0 : index
    %c0_12 = arith.constant 0 : index
    %17 = vector.load %arg6[%c0_11, %c0_12] : memref<1x8xf32, #tpu.memory_space<vmem>>, vector<1x8xf32>
    tpu.vector_store %arg6[%c0_11, %c0_12], %16 {strides = array<i32>} : memref<1x8xf32, #tpu.memory_space<vmem>>, vector<1x8xf32>,
    return
  }
  func.func @transform_0(%arg0: i32) -> (i32, i32) {
    %c0_i32 = arith.constant 0 : i32
    %c0_i32_0 = arith.constant 0 : i32
    return %arg0, %c0_i32 : i32, i32
  }
  func.func @transform_1(%arg0: i32) -> (i32, i32) {
    %c0_i32 = arith.constant 0 : i32
    %c0_i32_0 = arith.constant 0 : i32
    %c0_i32_1 = arith.constant 0 : i32
    return %c0_i32, %c0_i32_0 : i32, i32
  }
  func.func @transform_2(%arg0: i32) -> (i32, i32) {
    %c0_i32 = arith.constant 0 : i32
    %c0_i32_0 = arith.constant 0 : i32
    %c0_i32_1 = arith.constant 0 : i32
    return %c0_i32, %c0_i32_0 : i32, i32
  }
  func.func @transform_3(%arg0: i32) -> (i32, i32) {
    %c0_i32 = arith.constant 0 : i32
    %c0_i32_0 = arith.constant 0 : i32
    %c0_i32_1 = arith.constant 0 : i32
    return %c0_i32, %c0_i32_0 : i32, i32
  }
  func.func @transform_4(%arg0: i32) -> (i32, i32) {
    %c0_i32 = arith.constant 0 : i32
    %c0_i32_0 = arith.constant 0 : i32
    %c0_i32_1 = arith.constant 0 : i32
    return %c0_i32, %c0_i32_0 : i32, i32
  }
  func.func @transform_5(%arg0: i32) -> (i32, i32) {
    %c0_i32 = arith.constant 0 : i32
    %c0_i32_0 = arith.constant 0 : i32
    return %c0_i32, %arg0 : i32, i32
  }
}

</mosaic_0001>

<bundles_post_ra>
// kernel: tpu_custom_call.1
= control target key start
LH: loop header
LB: loop body
LE: loop exit
PB: predicated region body
PF: predicated region fallthrough
CT: control target
= control target key end

     0   :  { %s238_s0 = inlined_call_operand.vmem [shape: bf16[8,32], index: 0, kind: input, shape index: {}]   ;;  %s239_s1 = inlined_call_operand.vmem [shape: bf16[32,16], index: 1, kind: input, shape index: {}]   ;;  %s240_s2 = inlined_call_operand.vmem [shape: f32[1,16], index: 2, kind: input, shape index: {}]   ;;  %s241_s3 = inlined_call_operand.vmem [shape: f32[1,16], index: 3, kind: input, shape index: {}]   ;;  %s242_s4 = inlined_call_operand.<no memory space> [shape: f32[1,1], index: 4, kind: input, shape index: {}]   ;;  %s243_s5 = inlined_call_operand.hbm [shape: f32[1,8], index: 5, kind: output, shape index: {}]  }
   0x1   :  { %v10_v0 = vstv %s242_s4 }
   0x2   :  { %11 = vst [vmem:[#allocation2] sm:$0x1] %v10_v0 }
   0x3   :  { %v148_v1 = vld [vmem:[%s239_s1 + $0x8] sm:$0xff] }
   0x4   :  { %12 = vsyncpa [#allocation4], 0  ;;  %55 = vmatpush.bf16.msra.mxu0 %v148_v1  ;;  %v147_v2 = vld [vmem:[%s239_s1] sm:$0xff]  ;;  %vm45_vm0 = vcmask 261120   ;;  %v185_v5 = vmov 0   ;;  %vm71_vm1 = vcmask 130048  }
   0x5   :  { %v24_v3 = vld [vmem:[%s238_s0] sm:$0xf]  ;;  %151 = vset.pattern.permute.xlu0 %v185_v5  ;;  %s186_s0 = smov [#allocation3]   ;;  %s126_s29 = sshll.u32 %s243_s5, 4  ;;  %vm117_vm5 = vcmask 57344   ;;  %s127_s29 = int_to_ptr.hbm [resolvable:$true] %s126_s29 }
   0x6   :  { %v152_v6 = vld [vmem:[%s240_s2] ss:$0 sm:$0xff]  ;;  %s124_s2 = sshll.u32 %s186_s0, 4  ;;  %s125_s2 = int_to_ptr.vmem [resolvable:$true] %s124_s2 }
   0x7   :  { %v63_v11 = vld [vmem:[%s241_s3] sm:$0x1] }
   0x8   :  { %56 = vmatpush.bf16.msra.mxu0 %v147_v2 }
   0x9   :  { %v64_v4 = vld [vmem:[#allocation2] sm:$0x1] }
   0xa   :  { %67 = vperm.xlu0 %151, %v64_v4  }
   0xb   :  { %143 = vmatmul.msk.bf16.vlgmr.msra.gmra.mxu0 %vm45_vm0, %v24_v3 }
  0x7c   :  { %v68_v12 = vpop.permute.xlu0 %67 }
  0x7d   :  { %v70_v13 = vperm.slane %v68_v12, 0 }
  0x88   :  { %v58_v7 = vpop.f32.mrf.mxu0 }
  0x89   :  { %v59_v8 = vadd.f32 %v152_v6, %v58_v7 }
  0x8b   :  { %153 = vtanh.f32 %v59_v8 }
  0x90   :  { %v60_v9 = vpop.f32.mrf.mxu0 }
  0x91   :  { %v154_v10 = vpop.eup %153 }
  0x92   :  { %144 = vmatpush.xpose.msk.msra.mxu1 %vm71_vm1, %v154_v10 }
  0x95   :  { %145 = vmatmul.msk.f32.vlgmr.msra.gmra.mxu1 %vm71_vm1, %v63_v11 }
 0x112   :  { %v95_v14 = vpop.f32.mrf.mxu1 }
 0x113   :  { %v96_v15 = vadd.f32 %v95_v14, %v70_v13 }
 0x115   :  { %v146_v16 = vmul.f32 -1.442695, %v96_v15 }
 0x117   :  { %155 = vpow2.f32 %v146_v16 }
 0x11d   :  { %v156_v17 = vpop.eup %155 }
 0x11e   :  { %v101_v18 = vadd.f32 1.0, %v156_v17 }
 0x120   :  { %157 = vrcp.f32 %v101_v18  ;;  %v113_v22 = vand.u32 2147483648, %v101_v18  ;;  %v111_v24 = vand.u32 2147483647, %v101_v18  ;;  %vm107_vm3 = vweird.f32 %v101_v18 }
 0x122   :  { %v114_v26 = vor.u32 1.1754944e-38, %v113_v22  ;;  %vm112_vm6 = vcmp.eq.f32.partialorder %v111_v24, 8.507059e+37 }
 0x126   :  { %v158_v19 = vpop.eup %157 }
 0x127   :  { %v103_v20 = vmul.f32 %v158_v19, %v101_v18  ;;  %vm108_vm2 = vweird.f32 %v158_v19 }
 0x128   :  { %vm109_vm4 = vmor %vm107_vm3, %vm108_vm2 }
 0x129   :  { %v104_v21 = vsub.f32 1.0, %v103_v20 }
 0x12b   :  { %v105_v23 = vmul.f32 %v158_v19, %v104_v21 }
 0x12d   :  { %v106_v25 = vadd.f32 %v158_v19, %v105_v23 }
 0x12f   :  { %v110_v27 = vsel %vm109_vm4, %v158_v19, %v106_v25 }
 0x130   :  { %v115_v28 = vsel %vm112_vm6, %v114_v26, %v110_v27 }
 0x131   :  { %118 = vst.msk [vmem:[#allocation3] sm:$0x1] %vm117_vm5, %v115_v28 }
 0x132   :  { %129 = dma.vmem_to_hbm [thread:$0]  %s125_s2, 16, %s127_s29, [#allocation4]  }
 0x133   :  { %183 = dma.done.wait [#allocation4], 16  }
 0x134   :  { %184 = vsyncadd [#allocation4], 4294967280 }
 0x135   :  { %134 = vsyncpa [#allocation4], 1 }

// kernel: tpu_custom_call.1
= control target key start
LH: loop header
LB: loop body
LE: loop exit
PB: predicated region body
PF: predicated region fallthrough
CT: control target
= control target key end

     0   :  { %s238_s0 = inlined_call_operand.vmem [shape: bf16[8,32], index: 0, kind: input, shape index: {}]   ;;  %s239_s1 = inlined_call_operand.vmem [shape: bf16[32,16], index: 1, kind: input, shape index: {}]   ;;  %s240_s2 = inlined_call_operand.vmem [shape: f32[1,16], index: 2, kind: input, shape index: {}]   ;;  %s241_s3 = inlined_call_operand.vmem [shape: f32[1,16], index: 3, kind: input, shape index: {}]   ;;  %s242_s4 = inlined_call_operand.<no memory space> [shape: f32[1,1], index: 4, kind: input, shape index: {}]   ;;  %s243_s5 = inlined_call_operand.hbm [shape: f32[1,8], index: 5, kind: output, shape index: {}]  }
   0x1   :  { %v10_v0 = vstv %s242_s4 }
   0x2   :  { %11 = vst [vmem:[#allocation2] sm:$0x1] %v10_v0 }
   0x3   :  { %v148_v1 = vld [vmem:[%s239_s1 + $0x8] sm:$0xff] }
   0x4   :  { %12 = vsyncpa [#allocation4], 0  ;;  %55 = vmatpush.bf16.msra.mxu0 %v148_v1  ;;  %v147_v2 = vld [vmem:[%s239_s1] sm:$0xff]  ;;  %vm45_vm0 = vcmask 261120   ;;  %v185_v5 = vmov 0   ;;  %vm71_vm1 = vcmask 130048  }
   0x5   :  { %v24_v3 = vld [vmem:[%s238_s0] sm:$0xf]  ;;  %151 = vset.pattern.permute.xlu0 %v185_v5  ;;  %s186_s0 = smov [#allocation3]   ;;  %s126_s29 = sshll.u32 %s243_s5, 4  ;;  %vm117_vm5 = vcmask 57344   ;;  %s127_s29 = int_to_ptr.hbm [resolvable:$true] %s126_s29 }
   0x6   :  { %v152_v6 = vld [vmem:[%s240_s2] ss:$0 sm:$0xff]  ;;  %s124_s2 = sshll.u32 %s186_s0, 4  ;;  %s125_s2 = int_to_ptr.vmem [resolvable:$true] %s124_s2 }
   0x7   :  { %v63_v11 = vld [vmem:[%s241_s3] sm:$0x1] }
   0x8   :  { %56 = vmatpush.bf16.msra.mxu0 %v147_v2 }
   0x9   :  { %v64_v4 = vld [vmem:[#allocation2] sm:$0x1] }
   0xa   :  { %67 = vperm.xlu0 %151, %v64_v4  }
   0xb   :  { %143 = vmatmul.msk.bf16.vlgmr.msra.gmra.mxu0 %vm45_vm0, %v24_v3 }
  0x7c   :  { %v68_v12 = vpop.permute.xlu0 %67 }
  0x7d   :  { %v70_v13 = vperm.slane %v68_v12, 0 }
  0x88   :  { %v58_v7 = vpop.f32.mrf.mxu0 }
  0x89   :  { %v59_v8 = vadd.f32 %v152_v6, %v58_v7 }
  0x8b   :  { %153 = vtanh.f32 %v59_v8 }
  0x90   :  { %v60_v9 = vpop.f32.mrf.mxu0 }
  0x91   :  { %v154_v10 = vpop.eup %153 }
  0x92   :  { %144 = vmatpush.xpose.msk.msra.mxu1 %vm71_vm1, %v154_v10 }
  0x95   :  { %145 = vmatmul.msk.f32.vlgmr.msra.gmra.mxu1 %vm71_vm1, %v63_v11 }
 0x112   :  { %v95_v14 = vpop.f32.mrf.mxu1 }
 0x113   :  { %v96_v15 = vadd.f32 %v95_v14, %v70_v13 }
 0x115   :  { %v146_v16 = vmul.f32 -1.442695, %v96_v15 }
 0x117   :  { %155 = vpow2.f32 %v146_v16 }
 0x11d   :  { %v156_v17 = vpop.eup %155 }
 0x11e   :  { %v101_v18 = vadd.f32 1.0, %v156_v17 }
 0x120   :  { %157 = vrcp.f32 %v101_v18  ;;  %v113_v22 = vand.u32 2147483648, %v101_v18  ;;  %v111_v24 = vand.u32 2147483647, %v101_v18  ;;  %vm107_vm3 = vweird.f32 %v101_v18 }
 0x122   :  { %v114_v26 = vor.u32 1.1754944e-38, %v113_v22  ;;  %vm112_vm6 = vcmp.eq.f32.partialorder %v111_v24, 8.507059e+37 }
 0x126   :  { %v158_v19 = vpop.eup %157 }
 0x127   :  { %v103_v20 = vmul.f32 %v158_v19, %v101_v18  ;;  %vm108_vm2 = vweird.f32 %v158_v19 }
 0x128   :  { %vm109_vm4 = vmor %vm107_vm3, %vm108_vm2 }
 0x129   :  { %v104_v21 = vsub.f32 1.0, %v103_v20 }
 0x12b   :  { %v105_v23 = vmul.f32 %v158_v19, %v104_v21 }
 0x12d   :  { %v106_v25 = vadd.f32 %v158_v19, %v105_v23 }
 0x12f   :  { %v110_v27 = vsel %vm109_vm4, %v158_v19, %v106_v25 }
 0x130   :  { %v115_v28 = vsel %vm112_vm6, %v114_v26, %v110_v27 }
 0x131   :  { %118 = vst.msk [vmem:[#allocation3] sm:$0x1] %vm117_vm5, %v115_v28 }
 0x132   :  { %129 = dma.vmem_to_hbm [thread:$0]  %s125_s2, 16, %s127_s29, [#allocation4]  }
 0x133   :  { %183 = dma.done.wait [#allocation4], 16  }
 0x134   :  { %184 = vsyncadd [#allocation4], 4294967280 }
 0x135   :  { %134 = vsyncpa [#allocation4], 1 }

</bundles_post_ra>
